<compile_context>
chip_gen: v7x
topology: tpu7x:2x2x1
jax: 0.10.0
libtpu: 0.0.40
codegen_flags: <defaults>
</compile_context>

<pallas_src>
import jax
import jax.numpy as jnp
from jax.experimental import pallas as pl
from jax.experimental.pallas import tpu as pltpu


# ----------------------------- Pallas kernel ------------------------------ #

def bigru_head_kernel(ids_f_ref,          # (T*B, 1) int32, row t*B+b = ids[b, t]
                      ids_b_ref,          # (T*B, 1) int32, row t*B+b = ids[b, T-1-t]
                      table_ref,          # (V, E)   embedding table
                      wih_ref,            # (2, E, 6H)  [0]=fwd cols, [1]=bwd cols
                      whh_ref,            # (2H, 6H)    block-diagonal by direction
                      bgi_ref,            # (1, 6H)     [bir+bhr | ... | bin_f | bin_b]
                      bhn_ref,            # (1, 2H)     [b_hn_f | b_hn_b]
                      wlin_ref,           # (2H, C)
                      blin_ref,           # (1, C)
                      probs_ref, logits_ref):
    B, C = logits_ref.shape
    TB = ids_f_ref.shape[0]
    V, E = table_ref.shape
    H2 = whh_ref.shape[0]                 # 2*H  (both directions packed on lanes)
    H4 = 2 * H2                           # 4*H  (width of the packed r|z slab)
    T = TB // B

    # ------------------ off-critical-path precompute ------------------ #
    # Embedding gather as a one-hot matmul (no scattered VMEM loads).
    table = table_ref[...]                                                 # (V, E)
    vocab_iota = jax.lax.broadcasted_iota(jnp.int32, (TB, V), 1)
    onehot_f = (vocab_iota == ids_f_ref[...]).astype(jnp.float32)          # (TB, V)
    onehot_b = (vocab_iota == ids_b_ref[...]).astype(jnp.float32)
    emb_f = jnp.dot(onehot_f, table, preferred_element_type=jnp.float32)   # (TB, E)
    emb_b = jnp.dot(onehot_b, table, preferred_element_type=jnp.float32)   # time-reversed

    # Fused input-side contributions for ALL timesteps, BOTH directions, ALL gates.
    # Lane layout of the 6H axis: [r_f | r_b | z_f | z_b | n_f | n_b].
    gi = (jnp.dot(emb_f, wih_ref[0], preferred_element_type=jnp.float32)
          + jnp.dot(emb_b, wih_ref[1], preferred_element_type=jnp.float32)
          + bgi_ref[...])                                                  # (TB, 6H)

    whh = whh_ref[...]                                                     # (2H, 6H)
    b_hn = jnp.broadcast_to(bhn_ref[...], (B, H2))                         # hoisted

    # ------------------ serial recurrence (critical path) ------------------ #
    # PyTorch GRU cell, both directions packed on lanes:
    #   r = sigmoid(gi_r + W_hr h);  z = sigmoid(gi_z + W_hz h)
    #   n = tanh(gi_n + r * (W_hn h + b_hn));  h' = n + z * (h - n)
    h = jnp.zeros((B, H2), jnp.float32)         # [h_f | h_b]
    for t in range(T):                          # T=8, fully unrolled (static)
        gi_t = gi[t * B:(t + 1) * B]            # (B, 6H): fwd step t / bwd step T-1-t
        gh = jnp.dot(h, whh, preferred_element_type=jnp.float32)           # (B, 6H)
        rz = jax.nn.sigmoid(gi_t[:, :H4] + gh[:, :H4])                     # (B, 4H)
        r = rz[:, :H2]                          # (B, 2H) = [r_f | r_b]
        z = rz[:, H2:]                          # (B, 2H) = [z_f | z_b]
        n = jnp.tanh(gi_t[:, H4:] + r * (gh[:, H4:] + b_hn))               # (B, 2H)
        h = n + z * (h - n)                     # == (1 - z) * n + z * h

    # ------------------ head ------------------ #
    # h already equals torch.cat([h_fwd, h_bwd], dim=-1).
    logits = (jnp.dot(h, wlin_ref[...], preferred_element_type=jnp.float32)
              + blin_ref[...])                                             # (B, C)
    m = jnp.max(logits, axis=1, keepdims=True)
    e = jnp.exp(logits - m)
    probs = e / jnp.sum(e, axis=1, keepdims=True)   # exact division (1e-5 tolerance)

    logits_ref[...] = logits
    probs_ref[...] = probs


# --------------------------- param packing (one-time) ----------------------- #

def pack_params(params):
    """One-time repack of GRU/linear weights into the lane-packed kernel layout."""
    H = params["w_hh_f"].shape[0]
    E = params["w_ih_f"].shape[0]
    z_ih = jnp.zeros((E, H), jnp.float32)
    z_hh = jnp.zeros((H, H), jnp.float32)

    def gates(w):  # (D, 3H) with gate order [r, z, n]
        return w[:, 0:H], w[:, H:2 * H], w[:, 2 * H:3 * H]

    rfi, zfi, nfi = gates(params["w_ih_f"])
    rbi, zbi, nbi = gates(params["w_ih_b"])
    rfh, zfh, nfh = gates(params["w_hh_f"])
    rbh, zbh, nbh = gates(params["w_hh_b"])

    # lane layout: [r_f | r_b | z_f | z_b | n_f | n_b]
    wih_f = jnp.concatenate([rfi, z_ih, zfi, z_ih, nfi, z_ih], axis=1)     # (E, 6H)
    wih_b = jnp.concatenate([z_ih, rbi, z_ih, zbi, z_ih, nbi], axis=1)     # (E, 6H)
    whh = jnp.concatenate(
        [jnp.concatenate([rfh, z_hh, zfh, z_hh, nfh, z_hh], axis=1),       # rows = h_f
         jnp.concatenate([z_hh, rbh, z_hh, zbh, z_hh, nbh], axis=1)],      # rows = h_b
        axis=0)                                                            # (2H, 6H)

    bif, bhf = params["b_ih_f"][0], params["b_hh_f"][0]
    bib, bhb = params["b_ih_b"][0], params["b_hh_b"][0]
    b_gi = jnp.concatenate([
        bif[0:H] + bhf[0:H],               bib[0:H] + bhb[0:H],            # r_f, r_b
        bif[H:2 * H] + bhf[H:2 * H],       bib[H:2 * H] + bhb[H:2 * H],    # z_f, z_b
        bif[2 * H:3 * H],                  bib[2 * H:3 * H],               # n_f, n_b (b_in)
    ])[None, :]                                                            # (1, 6H)
    b_hn = jnp.concatenate([bhf[2 * H:3 * H], bhb[2 * H:3 * H]])[None, :]  # (1, 2H)

    return {"table": params["embedding"],
            "wih": jnp.stack([wih_f, wih_b], axis=0),                      # (2, E, 6H)
            "whh": whh, "b_gi": b_gi, "b_hn": b_hn,
            "w_lin": params["w_lin"], "b_lin": params["b_lin"]}


# ------------------------------ JAX wrapper -------------------------------- #

@jax.jit
def bilstm_forward(ids, packed):
    """ids: (B, T) int32 token ids; packed: output of pack_params.
    Returns (probs, logits), each (B, C)."""
    B, T = ids.shape
    C = packed["w_lin"].shape[1]

    ids_tm = ids.T.astype(jnp.int32)                  # (T, B) time-major
    ids_f = ids_tm.reshape(T * B, 1)                  # forward time order
    ids_b = ids_tm[::-1].reshape(T * B, 1)            # reversed time order

    args = (ids_f, ids_b, packed["table"], packed["wih"], packed["whh"],
            packed["b_gi"], packed["b_hn"], packed["w_lin"], packed["b_lin"])
    vmem = lambda: pl.BlockSpec(memory_space=pltpu.MemorySpace.VMEM)

    probs, logits = pl.pallas_call(
        bigru_head_kernel,
        out_shape=(jax.ShapeDtypeStruct((B, C), jnp.float32),
                   jax.ShapeDtypeStruct((B, C), jnp.float32)),
        in_specs=[vmem() for _ in args],
        out_specs=(vmem(), vmem()),
    )(*args)
    return probs, logits


# --------------------------- reference (pure JAX) --------------------------- #

def _ref_gru_cell(x, h, w_ih, w_hh, b_ih, b_hh, H):
    gi = jnp.dot(x, w_ih, preferred_element_type=jnp.float32) + b_ih   # (B, 3H)
    gh = jnp.dot(h, w_hh, preferred_element_type=jnp.float32) + b_hh   # (B, 3H)
    r = jax.nn.sigmoid(gi[:, 0:H] + gh[:, 0:H])
    z = jax.nn.sigmoid(gi[:, H:2 * H] + gh[:, H:2 * H])
    n = jnp.tanh(gi[:, 2 * H:3 * H] + r * gh[:, 2 * H:3 * H])
    return (1.0 - z) * n + z * h


def reference_forward(ids, params):
    emb = params["embedding"][ids]            # (B, T, E)
    B, T, _ = emb.shape
    H = params["w_hh_f"].shape[0]

    h_f = jnp.zeros((B, H), jnp.float32)
    for t in range(T):
        h_f = _ref_gru_cell(emb[:, t, :], h_f, params["w_ih_f"], params["w_hh_f"],
                            params["b_ih_f"], params["b_hh_f"], H)
    h_b = jnp.zeros((B, H), jnp.float32)
    for t in reversed(range(T)):
        h_b = _ref_gru_cell(emb[:, t, :], h_b, params["w_ih_b"], params["w_hh_b"],
                            params["b_ih_b"], params["b_hh_b"], H)

    hcat = jnp.concatenate([h_f, h_b], axis=-1)
    logits = hcat @ params["w_lin"] + params["b_lin"]
    probs = jax.nn.softmax(logits, axis=1)
    return probs, logits


# --------------------------------- main ------------------------------------ #

def init_params(key, vocab_size, E, H, C):
    ks = jax.random.split(key, 12)
    s = 0.1
    return {
        "embedding": s * jax.random.normal(ks[0], (vocab_size, E), jnp.float32),
        "w_ih_f": s * jax.random.normal(ks[1], (E, 3 * H), jnp.float32),
        "w_hh_f": s * jax.random.normal(ks[2], (H, 3 * H), jnp.float32),
        "b_ih_f": s * jax.random.normal(ks[3], (1, 3 * H), jnp.float32),
        "b_hh_f": s * jax.random.normal(ks[4], (1, 3 * H), jnp.float32),
        "w_ih_b": s * jax.random.normal(ks[5], (E, 3 * H), jnp.float32),
        "w_hh_b": s * jax.random.normal(ks[6], (H, 3 * H), jnp.float32),
        "b_ih_b": s * jax.random.normal(ks[7], (1, 3 * H), jnp.float32),
        "b_hh_b": s * jax.random.normal(ks[8], (1, 3 * H), jnp.float32),
        "w_lin": s * jax.random.normal(ks[9], (2 * H, C), jnp.float32),
        "b_lin": s * jax.random.normal(ks[10], (1, C), jnp.float32),
    }


if __name__ == "__main__":
    # Model config: vocab=50, embedding=16, hidden=32, num_layers=1,
    # num_directions=2, num_class=4. Input: batch=2, seq=8 token ids.
    vocab_size, E, H, C = 50, 16, 32, 4
    B, T = 2, 8

    key = jax.random.PRNGKey(0)
    k_ids, k_par = jax.random.split(key)
    ids = jax.random.randint(k_ids, (B, T), 0, vocab_size, dtype=jnp.int32)
    params = init_params(k_par, vocab_size, E, H, C)
    packed = pack_params(params)   # one-time weight repack, hoisted out of the forward

    probs, logits = jax.block_until_ready(bilstm_forward(ids, packed))
    ref_probs, ref_logits = reference_forward(ids, params)

    assert probs.shape == (B, C) and logits.shape == (B, C)
    assert jnp.allclose(logits, ref_logits, atol=1e-5, rtol=1e-5)
    assert jnp.allclose(probs, ref_probs, atol=1e-5, rtol=1e-5)

    print("KERNEL_OK")
</pallas_src>

<mosaic_0001>
module attributes {stable_mosaic.version = 11 : i64} {
  func.func @bigru_head_kernel(%arg0: memref<16x1xi32, #tpu.memory_space<vmem>>, %arg1: memref<16x1xi32, #tpu.memory_space<vmem>>, %arg2: memref<50x16xf32, #tpu.memory_space<vmem>>, %arg3: memref<2x16x192xf32, #tpu.memory_space<vmem>>, %arg4: memref<64x192xf32, #tpu.memory_space<vmem>>, %arg5: memref<1x192xf32, #tpu.memory_space<vmem>>, %arg6: memref<1x64xf32, #tpu.memory_space<vmem>>, %arg7: memref<64x4xf32, #tpu.memory_space<vmem>>, %arg8: memref<1x4xf32, #tpu.memory_space<vmem>>, %arg9: memref<2x4xf32, #tpu.memory_space<vmem>>, %arg10: memref<2x4xf32, #tpu.memory_space<vmem>>) attributes {dimension_semantics = [], scalar_prefetch = 0 : i64, scratch_operands = 0 : i64, tpu.core_type = #tpu.core_type<tc>} {
    %c0 = arith.constant 0 : index
    %c0_0 = arith.constant 0 : index
    %0 = vector.load %arg2[%c0, %c0_0] : memref<50x16xf32, #tpu.memory_space<vmem>>, vector<50x16xf32>
    %1 = tpu.iota {dimensions = array<i32: 1>} : vector<16x50xi32>
    %c0_1 = arith.constant 0 : index
    %c0_2 = arith.constant 0 : index
    %2 = vector.load %arg0[%c0_1, %c0_2] : memref<16x1xi32, #tpu.memory_space<vmem>>, vector<16x1xi32>
    %3 = vector.broadcast %2 : vector<16x1xi32> to vector<16x50xi32>
    %4 = arith.cmpi eq, %1, %3 : vector<16x50xi32>
    %5 = arith.extui %4 : vector<16x50xi1> to vector<16x50xi32>
    %6 = arith.sitofp %5 : vector<16x50xi32> to vector<16x50xf32>
    %c0_3 = arith.constant 0 : index
    %c0_4 = arith.constant 0 : index
    %7 = vector.load %arg1[%c0_3, %c0_4] : memref<16x1xi32, #tpu.memory_space<vmem>>, vector<16x1xi32>
    %8 = vector.broadcast %7 : vector<16x1xi32> to vector<16x50xi32>
    %9 = arith.cmpi eq, %1, %8 : vector<16x50xi32>
    %10 = arith.extui %9 : vector<16x50xi1> to vector<16x50xi32>
    %11 = arith.sitofp %10 : vector<16x50xi32> to vector<16x50xf32>
    %cst = arith.constant dense<0.000000e+00> : vector<16x16xf32>
    %12 = tpu.matmul %6, %0, %cst {dimension_numbers = #tpu.dot_dimension_numbers<[1], [0], [0], [1], [0, 0, 1, 1], [], []>} : vector<16x50xf32>, vector<50x16xf32>, vector<16x16xf32> -> vector<16x16xf32>
    %cst_5 = arith.constant dense<0.000000e+00> : vector<16x16xf32>
    %13 = tpu.matmul %11, %0, %cst_5 {dimension_numbers = #tpu.dot_dimension_numbers<[1], [0], [0], [1], [0, 0, 1, 1], [], []>} : vector<16x50xf32>, vector<50x16xf32>, vector<16x16xf32> -> vector<16x16xf32>
    %c0_6 = arith.constant 0 : index
    %c0_7 = arith.constant 0 : index
    %c0_8 = arith.constant 0 : index
    %14 = vector.load %arg3[%c0_6, %c0_7, %c0_8] : memref<2x16x192xf32, #tpu.memory_space<vmem>>, vector<1x16x192xf32>
    %15 = vector.shape_cast %14 : vector<1x16x192xf32> to vector<16x192xf32>
    %cst_9 = arith.constant dense<0.000000e+00> : vector<16x192xf32>
    %16 = tpu.matmul %12, %15, %cst_9 {dimension_numbers = #tpu.dot_dimension_numbers<[1], [0], [0], [1], [0, 0, 1, 1], [], []>} : vector<16x16xf32>, vector<16x192xf32>, vector<16x192xf32> -> vector<16x192xf32>
    %c1 = arith.constant 1 : index
    %c0_10 = arith.constant 0 : index
    %c0_11 = arith.constant 0 : index
    %17 = vector.load %arg3[%c1, %c0_10, %c0_11] : memref<2x16x192xf32, #tpu.memory_space<vmem>>, vector<1x16x192xf32>
    %18 = vector.shape_cast %17 : vector<1x16x192xf32> to vector<16x192xf32>
    %cst_12 = arith.constant dense<0.000000e+00> : vector<16x192xf32>
    %19 = tpu.matmul %13, %18, %cst_12 {dimension_numbers = #tpu.dot_dimension_numbers<[1], [0], [0], [1], [0, 0, 1, 1], [], []>} : vector<16x16xf32>, vector<16x192xf32>, vector<16x192xf32> -> vector<16x192xf32>
    %20 = arith.addf %16, %19 : vector<16x192xf32>
    %c0_13 = arith.constant 0 : index
    %c0_14 = arith.constant 0 : index
    %21 = vector.load %arg5[%c0_13, %c0_14] : memref<1x192xf32, #tpu.memory_space<vmem>>, vector<1x192xf32>
    %22 = vector.broadcast %21 : vector<1x192xf32> to vector<16x192xf32>
    %23 = arith.addf %20, %22 : vector<16x192xf32>
    %c0_15 = arith.constant 0 : index
    %c0_16 = arith.constant 0 : index
    %24 = vector.load %arg4[%c0_15, %c0_16] : memref<64x192xf32, #tpu.memory_space<vmem>>, vector<64x192xf32>
    %c0_17 = arith.constant 0 : index
    %c0_18 = arith.constant 0 : index
    %25 = vector.load %arg6[%c0_17, %c0_18] : memref<1x64xf32, #tpu.memory_space<vmem>>, vector<1x64xf32>
    %26 = vector.shape_cast %25 : vector<1x64xf32> to vector<1x64xf32>
    %27 = vector.broadcast %26 : vector<1x64xf32> to vector<2x64xf32>
    %cst_19 = arith.constant 0.000000e+00 : f32
    %28 = vector.broadcast %cst_19 : f32 to vector<2x64xf32>
    %29 = vector.extract_strided_slice %23 {offsets = [0, 0], sizes = [2, 192], strides = [1, 1]} : vector<16x192xf32> to vector<2x192xf32>
    %cst_20 = arith.constant dense<0.000000e+00> : vector<2x192xf32>
    %30 = tpu.matmul %28, %24, %cst_20 {dimension_numbers = #tpu.dot_dimension_numbers<[1], [0], [0], [1], [0, 0, 1, 1], [], []>} : vector<2x64xf32>, vector<64x192xf32>, vector<2x192xf32> -> vector<2x192xf32>
    %31 = vector.extract_strided_slice %29 {offsets = [0, 0], sizes = [2, 128], strides = [1, 1]} : vector<2x192xf32> to vector<2x128xf32>
    %32 = vector.extract_strided_slice %30 {offsets = [0, 0], sizes = [2, 128], strides = [1, 1]} : vector<2x192xf32> to vector<2x128xf32>
    %33 = arith.addf %31, %32 : vector<2x128xf32>
    %34 = arith.negf %33 : vector<2x128xf32>
    %35 = math.exp %34 : vector<2x128xf32>
    %cst_21 = arith.constant 1.000000e+00 : f32
    %36 = vector.broadcast %cst_21 : f32 to vector<2x128xf32>
    %37 = arith.addf %36, %35 : vector<2x128xf32>
    %38 = arith.divf %36, %37 : vector<2x128xf32>
    %39 = vector.extract_strided_slice %38 {offsets = [0, 0], sizes = [2, 64], strides = [1, 1]} : vector<2x128xf32> to vector<2x64xf32>
    %40 = vector.extract_strided_slice %38 {offsets = [0, 64], sizes = [2, 64], strides = [1, 1]} : vector<2x128xf32> to vector<2x64xf32>
    %41 = vector.extract_strided_slice %29 {offsets = [0, 128], sizes = [2, 64], strides = [1, 1]} : vector<2x192xf32> to vector<2x64xf32>
    %42 = vector.extract_strided_slice %30 {offsets = [0, 128], sizes = [2, 64], strides = [1, 1]} : vector<2x192xf32> to vector<2x64xf32>
    %43 = arith.addf %42, %27 : vector<2x64xf32>
    %44 = arith.mulf %39, %43 : vector<2x64xf32>
    %45 = arith.addf %41, %44 : vector<2x64xf32>
    %46 = math.tanh %45 : vector<2x64xf32>
    %47 = arith.subf %28, %46 : vector<2x64xf32>
    %48 = arith.mulf %40, %47 : vector<2x64xf32>
    %49 = arith.addf %46, %48 : vector<2x64xf32>
    %50 = vector.extract_strided_slice %23 {offsets = [2, 0], sizes = [2, 192], strides = [1, 1]} : vector<16x192xf32> to vector<2x192xf32>
    %cst_22 = arith.constant dense<0.000000e+00> : vector<2x192xf32>
    %51 = tpu.matmul %49, %24, %cst_22 {dimension_numbers = #tpu.dot_dimension_numbers<[1], [0], [0], [1], [0, 0, 1, 1], [], []>} : vector<2x64xf32>, vector<64x192xf32>, vector<2x192xf32> -> vector<2x192xf32>
    %52 = vector.extract_strided_slice %50 {offsets = [0, 0], sizes = [2, 128], strides = [1, 1]} : vector<2x192xf32> to vector<2x128xf32>
    %53 = vector.extract_strided_slice %51 {offsets = [0, 0], sizes = [2, 128], strides = [1, 1]} : vector<2x192xf32> to vector<2x128xf32>
    %54 = arith.addf %52, %53 : vector<2x128xf32>
    %55 = arith.negf %54 : vector<2x128xf32>
    %56 = math.exp %55 : vector<2x128xf32>
    %cst_23 = arith.constant 1.000000e+00 : f32
    %57 = vector.broadcast %cst_23 : f32 to vector<2x128xf32>
    %58 = arith.addf %57, %56 : vector<2x128xf32>
    %59 = arith.divf %57, %58 : vector<2x128xf32>
    %60 = vector.extract_strided_slice %59 {offsets = [0, 0], sizes = [2, 64], strides = [1, 1]} : vector<2x128xf32> to vector<2x64xf32>
    %61 = vector.extract_strided_slice %59 {offsets = [0, 64], sizes = [2, 64], strides = [1, 1]} : vector<2x128xf32> to vector<2x64xf32>
    %62 = vector.extract_strided_slice %50 {offsets = [0, 128], sizes = [2, 64], strides = [1, 1]} : vector<2x192xf32> to vector<2x64xf32>
    %63 = vector.extract_strided_slice %51 {offsets = [0, 128], sizes = [2, 64], strides = [1, 1]} : vector<2x192xf32> to vector<2x64xf32>
    %64 = arith.addf %63, %27 : vector<2x64xf32>
    %65 = arith.mulf %60, %64 : vector<2x64xf32>
    %66 = arith.addf %62, %65 : vector<2x64xf32>
    %67 = math.tanh %66 : vector<2x64xf32>
    %68 = arith.subf %49, %67 : vector<2x64xf32>
    %69 = arith.mulf %61, %68 : vector<2x64xf32>
    %70 = arith.addf %67, %69 : vector<2x64xf32>
    %71 = vector.extract_strided_slice %23 {offsets = [4, 0], sizes = [2, 192], strides = [1, 1]} : vector<16x192xf32> to vector<2x192xf32>
    %cst_24 = arith.constant dense<0.000000e+00> : vector<2x192xf32>
    %72 = tpu.matmul %70, %24, %cst_24 {dimension_numbers = #tpu.dot_dimension_numbers<[1], [0], [0], [1], [0, 0, 1, 1], [], []>} : vector<2x64xf32>, vector<64x192xf32>, vector<2x192xf32> -> vector<2x192xf32>
    %73 = vector.extract_strided_slice %71 {offsets = [0, 0], sizes = [2, 128], strides = [1, 1]} : vector<2x192xf32> to vector<2x128xf32>
    %74 = vector.extract_strided_slice %72 {offsets = [0, 0], sizes = [2, 128], strides = [1, 1]} : vector<2x192xf32> to vector<2x128xf32>
    %75 = arith.addf %73, %74 : vector<2x128xf32>
    %76 = arith.negf %75 : vector<2x128xf32>
    %77 = math.exp %76 : vector<2x128xf32>
    %cst_25 = arith.constant 1.000000e+00 : f32
    %78 = vector.broadcast %cst_25 : f32 to vector<2x128xf32>
    %79 = arith.addf %78, %77 : vector<2x128xf32>
    %80 = arith.divf %78, %79 : vector<2x128xf32>
    %81 = vector.extract_strided_slice %80 {offsets = [0, 0], sizes = [2, 64], strides = [1, 1]} : vector<2x128xf32> to vector<2x64xf32>
    %82 = vector.extract_strided_slice %80 {offsets = [0, 64], sizes = [2, 64], strides = [1, 1]} : vector<2x128xf32> to vector<2x64xf32>
    %83 = vector.extract_strided_slice %71 {offsets = [0, 128], sizes = [2, 64], strides = [1, 1]} : vector<2x192xf32> to vector<2x64xf32>
    %84 = vector.extract_strided_slice %72 {offsets = [0, 128], sizes = [2, 64], strides = [1, 1]} : vector<2x192xf32> to vector<2x64xf32>
    %85 = arith.addf %84, %27 : vector<2x64xf32>
    %86 = arith.mulf %81, %85 : vector<2x64xf32>
    %87 = arith.addf %83, %86 : vector<2x64xf32>
    %88 = math.tanh %87 : vector<2x64xf32>
    %89 = arith.subf %70, %88 : vector<2x64xf32>
    %90 = arith.mulf %82, %89 : vector<2x64xf32>
    %91 = arith.addf %88, %90 : vector<2x64xf32>
    %92 = vector.extract_strided_slice %23 {offsets = [6, 0], sizes = [2, 192], strides = [1, 1]} : vector<16x192xf32> to vector<2x192xf32>
    %cst_26 = arith.constant dense<0.000000e+00> : vector<2x192xf32>
    %93 = tpu.matmul %91, %24, %cst_26 {dimension_numbers = #tpu.dot_dimension_numbers<[1], [0], [0], [1], [0, 0, 1, 1], [], []>} : vector<2x64xf32>, vector<64x192xf32>, vector<2x192xf32> -> vector<2x192xf32>
    %94 = vector.extract_strided_slice %92 {offsets = [0, 0], sizes = [2, 128], strides = [1, 1]} : vector<2x192xf32> to vector<2x128xf32>
    %95 = vector.extract_strided_slice %93 {offsets = [0, 0], sizes = [2, 128], strides = [1, 1]} : vector<2x192xf32> to vector<2x128xf32>
    %96 = arith.addf %94, %95 : vector<2x128xf32>
    %97 = arith.negf %96 : vector<2x128xf32>
    %98 = math.exp %97 : vector<2x128xf32>
    %cst_27 = arith.constant 1.000000e+00 : f32
    %99 = vector.broadcast %cst_27 : f32 to vector<2x128xf32>
    %100 = arith.addf %99, %98 : vector<2x128xf32>
    %101 = arith.divf %99, %100 : vector<2x128xf32>
    %102 = vector.extract_strided_slice %101 {offsets = [0, 0], sizes = [2, 64], strides = [1, 1]} : vector<2x128xf32> to vector<2x64xf32>
    %103 = vector.extract_strided_slice %101 {offsets = [0, 64], sizes = [2, 64], strides = [1, 1]} : vector<2x128xf32> to vector<2x64xf32>
    %104 = vector.extract_strided_slice %92 {offsets = [0, 128], sizes = [2, 64], strides = [1, 1]} : vector<2x192xf32> to vector<2x64xf32>
    %105 = vector.extract_strided_slice %93 {offsets = [0, 128], sizes = [2, 64], strides = [1, 1]} : vector<2x192xf32> to vector<2x64xf32>
    %106 = arith.addf %105, %27 : vector<2x64xf32>
    %107 = arith.mulf %102, %106 : vector<2x64xf32>
    %108 = arith.addf %104, %107 : vector<2x64xf32>
    %109 = math.tanh %108 : vector<2x64xf32>
    %110 = arith.subf %91, %109 : vector<2x64xf32>
    %111 = arith.mulf %103, %110 : vector<2x64xf32>
    %112 = arith.addf %109, %111 : vector<2x64xf32>
    %113 = vector.extract_strided_slice %23 {offsets = [8, 0], sizes = [2, 192], strides = [1, 1]} : vector<16x192xf32> to vector<2x192xf32>
    %cst_28 = arith.constant dense<0.000000e+00> : vector<2x192xf32>
    %114 = tpu.matmul %112, %24, %cst_28 {dimension_numbers = #tpu.dot_dimension_numbers<[1], [0], [0], [1], [0, 0, 1, 1], [], []>} : vector<2x64xf32>, vector<64x192xf32>, vector<2x192xf32> -> vector<2x192xf32>
    %115 = vector.extract_strided_slice %113 {offsets = [0, 0], sizes = [2, 128], strides = [1, 1]} : vector<2x192xf32> to vector<2x128xf32>
    %116 = vector.extract_strided_slice %114 {offsets = [0, 0], sizes = [2, 128], strides = [1, 1]} : vector<2x192xf32> to vector<2x128xf32>
    %117 = arith.addf %115, %116 : vector<2x128xf32>
    %118 = arith.negf %117 : vector<2x128xf32>
    %119 = math.exp %118 : vector<2x128xf32>
    %cst_29 = arith.constant 1.000000e+00 : f32
    %120 = vector.broadcast %cst_29 : f32 to vector<2x128xf32>
    %121 = arith.addf %120, %119 : vector<2x128xf32>
    %122 = arith.divf %120, %121 : vector<2x128xf32>
    %123 = vector.extract_strided_slice %122 {offsets = [0, 0], sizes = [2, 64], strides = [1, 1]} : vector<2x128xf32> to vector<2x64xf32>
    %124 = vector.extract_strided_slice %122 {offsets = [0, 64], sizes = [2, 64], strides = [1, 1]} : vector<2x128xf32> to vector<2x64xf32>
    %125 = vector.extract_strided_slice %113 {offsets = [0, 128], sizes = [2, 64], strides = [1, 1]} : vector<2x192xf32> to vector<2x64xf32>
    %126 = vector.extract_strided_slice %114 {offsets = [0, 128], sizes = [2, 64], strides = [1, 1]} : vector<2x192xf32> to vector<2x64xf32>
    %127 = arith.addf %126, %27 : vector<2x64xf32>
    %128 = arith.mulf %123, %127 : vector<2x64xf32>
    %129 = arith.addf %125, %128 : vector<2x64xf32>
    %130 = math.tanh %129 : vector<2x64xf32>
    %131 = arith.subf %112, %130 : vector<2x64xf32>
    %132 = arith.mulf %124, %131 : vector<2x64xf32>
    %133 = arith.addf %130, %132 : vector<2x64xf32>
    %134 = vector.extract_strided_slice %23 {offsets = [10, 0], sizes = [2, 192], strides = [1, 1]} : vector<16x192xf32> to vector<2x192xf32>
    %cst_30 = arith.constant dense<0.000000e+00> : vector<2x192xf32>
    %135 = tpu.matmul %133, %24, %cst_30 {dimension_numbers = #tpu.dot_dimension_numbers<[1], [0], [0], [1], [0, 0, 1, 1], [], []>} : vector<2x64xf32>, vector<64x192xf32>, vector<2x192xf32> -> vector<2x192xf32>
    %136 = vector.extract_strided_slice %134 {offsets = [0, 0], sizes = [2, 128], strides = [1, 1]} : vector<2x192xf32> to vector<2x128xf32>
    %137 = vector.extract_strided_slice %135 {offsets = [0, 0], sizes = [2, 128], strides = [1, 1]} : vector<2x192xf32> to vector<2x128xf32>
    %138 = arith.addf %136, %137 : vector<2x128xf32>
    %139 = arith.negf %138 : vector<2x128xf32>
    %140 = math.exp %139 : vector<2x128xf32>
    %cst_31 = arith.constant 1.000000e+00 : f32
    %141 = vector.broadcast %cst_31 : f32 to vector<2x128xf32>
    %142 = arith.addf %141, %140 : vector<2x128xf32>
    %143 = arith.divf %141, %142 : vector<2x128xf32>
    %144 = vector.extract_strided_slice %143 {offsets = [0, 0], sizes = [2, 64], strides = [1, 1]} : vector<2x128xf32> to vector<2x64xf32>
    %145 = vector.extract_strided_slice %143 {offsets = [0, 64], sizes = [2, 64], strides = [1, 1]} : vector<2x128xf32> to vector<2x64xf32>
    %146 = vector.extract_strided_slice %134 {offsets = [0, 128], sizes = [2, 64], strides = [1, 1]} : vector<2x192xf32> to vector<2x64xf32>
    %147 = vector.extract_strided_slice %135 {offsets = [0, 128], sizes = [2, 64], strides = [1, 1]} : vector<2x192xf32> to vector<2x64xf32>
    %148 = arith.addf %147, %27 : vector<2x64xf32>
    %149 = arith.mulf %144, %148 : vector<2x64xf32>
    %150 = arith.addf %146, %149 : vector<2x64xf32>
    %151 = math.tanh %150 : vector<2x64xf32>
    %152 = arith.subf %133, %151 : vector<2x64xf32>
    %153 = arith.mulf %145, %152 : vector<2x64xf32>
    %154 = arith.addf %151, %153 : vector<2x64xf32>
    %155 = vector.extract_strided_slice %23 {offsets = [12, 0], sizes = [2, 192], strides = [1, 1]} : vector<16x192xf32> to vector<2x192xf32>
    %cst_32 = arith.constant dense<0.000000e+00> : vector<2x192xf32>
    %156 = tpu.matmul %154, %24, %cst_32 {dimension_numbers = #tpu.dot_dimension_numbers<[1], [0], [0], [1], [0, 0, 1, 1], [], []>} : vector<2x64xf32>, vector<64x192xf32>, vector<2x192xf32> -> vector<2x192xf32>
    %157 = vector.extract_strided_slice %155 {offsets = [0, 0], sizes = [2, 128], strides = [1, 1]} : vector<2x192xf32> to vector<2x128xf32>
    %158 = vector.extract_strided_slice %156 {offsets = [0, 0], sizes = [2, 128], strides = [1, 1]} : vector<2x192xf32> to vector<2x128xf32>
    %159 = arith.addf %157, %158 : vector<2x128xf32>
    %160 = arith.negf %159 : vector<2x128xf32>
    %161 = math.exp %160 : vector<2x128xf32>
    %cst_33 = arith.constant 1.000000e+00 : f32
    %162 = vector.broadcast %cst_33 : f32 to vector<2x128xf32>
    %163 = arith.addf %162, %161 : vector<2x128xf32>
    %164 = arith.divf %162, %163 : vector<2x128xf32>
    %165 = vector.extract_strided_slice %164 {offsets = [0, 0], sizes = [2, 64], strides = [1, 1]} : vector<2x128xf32> to vector<2x64xf32>
    %166 = vector.extract_strided_slice %164 {offsets = [0, 64], sizes = [2, 64], strides = [1, 1]} : vector<2x128xf32> to vector<2x64xf32>
    %167 = vector.extract_strided_slice %155 {offsets = [0, 128], sizes = [2, 64], strides = [1, 1]} : vector<2x192xf32> to vector<2x64xf32>
    %168 = vector.extract_strided_slice %156 {offsets = [0, 128], sizes = [2, 64], strides = [1, 1]} : vector<2x192xf32> to vector<2x64xf32>
    %169 = arith.addf %168, %27 : vector<2x64xf32>
    %170 = arith.mulf %165, %169 : vector<2x64xf32>
    %171 = arith.addf %167, %170 : vector<2x64xf32>
    %172 = math.tanh %171 : vector<2x64xf32>
    %173 = arith.subf %154, %172 : vector<2x64xf32>
    %174 = arith.mulf %166, %173 : vector<2x64xf32>
    %175 = arith.addf %172, %174 : vector<2x64xf32>
    %176 = vector.extract_strided_slice %23 {offsets = [14, 0], sizes = [2, 192], strides = [1, 1]} : vector<16x192xf32> to vector<2x192xf32>
    %cst_34 = arith.constant dense<0.000000e+00> : vector<2x192xf32>
    %177 = tpu.matmul %175, %24, %cst_34 {dimension_numbers = #tpu.dot_dimension_numbers<[1], [0], [0], [1], [0, 0, 1, 1], [], []>} : vector<2x64xf32>, vector<64x192xf32>, vector<2x192xf32> -> vector<2x192xf32>
    %178 = vector.extract_strided_slice %176 {offsets = [0, 0], sizes = [2, 128], strides = [1, 1]} : vector<2x192xf32> to vector<2x128xf32>
    %179 = vector.extract_strided_slice %177 {offsets = [0, 0], sizes = [2, 128], strides = [1, 1]} : vector<2x192xf32> to vector<2x128xf32>
    %180 = arith.addf %178, %179 : vector<2x128xf32>
    %181 = arith.negf %180 : vector<2x128xf32>
    %182 = math.exp %181 : vector<2x128xf32>
    %cst_35 = arith.constant 1.000000e+00 : f32
    %183 = vector.broadcast %cst_35 : f32 to vector<2x128xf32>
    %184 = arith.addf %183, %182 : vector<2x128xf32>
    %185 = arith.divf %183, %184 : vector<2x128xf32>
    %186 = vector.extract_strided_slice %185 {offsets = [0, 0], sizes = [2, 64], strides = [1, 1]} : vector<2x128xf32> to vector<2x64xf32>
    %187 = vector.extract_strided_slice %185 {offsets = [0, 64], sizes = [2, 64], strides = [1, 1]} : vector<2x128xf32> to vector<2x64xf32>
    %188 = vector.extract_strided_slice %176 {offsets = [0, 128], sizes = [2, 64], strides = [1, 1]} : vector<2x192xf32> to vector<2x64xf32>
    %189 = vector.extract_strided_slice %177 {offsets = [0, 128], sizes = [2, 64], strides = [1, 1]} : vector<2x192xf32> to vector<2x64xf32>
    %190 = arith.addf %189, %27 : vector<2x64xf32>
    %191 = arith.mulf %186, %190 : vector<2x64xf32>
    %192 = arith.addf %188, %191 : vector<2x64xf32>
    %193 = math.tanh %192 : vector<2x64xf32>
    %194 = arith.subf %175, %193 : vector<2x64xf32>
    %195 = arith.mulf %187, %194 : vector<2x64xf32>
    %196 = arith.addf %193, %195 : vector<2x64xf32>
    %c0_36 = arith.constant 0 : index
    %c0_37 = arith.constant 0 : index
    %197 = vector.load %arg7[%c0_36, %c0_37] : memref<64x4xf32, #tpu.memory_space<vmem>>, vector<64x4xf32>
    %cst_38 = arith.constant dense<0.000000e+00> : vector<2x4xf32>
    %198 = tpu.matmul %196, %197, %cst_38 {dimension_numbers = #tpu.dot_dimension_numbers<[1], [0], [0], [1], [0, 0, 1, 1], [], []>} : vector<2x64xf32>, vector<64x4xf32>, vector<2x4xf32> -> vector<2x4xf32>
    %c0_39 = arith.constant 0 : index
    %c0_40 = arith.constant 0 : index
    %199 = vector.load %arg8[%c0_39, %c0_40] : memref<1x4xf32, #tpu.memory_space<vmem>>, vector<1x4xf32>
    %200 = vector.broadcast %199 : vector<1x4xf32> to vector<2x4xf32>
    %201 = arith.addf %198, %200 : vector<2x4xf32>
    %cst_41 = arith.constant dense<0xFF800000> : vector<2xf32>
    %202 = vector.multi_reduction <maximumf>, %201, %cst_41 [1] : vector<2x4xf32> to vector<2xf32>
    %203 = vector.shape_cast %202 : vector<2xf32> to vector<2x1xf32>
    %204 = vector.broadcast %203 : vector<2x1xf32> to vector<2x4xf32>
    %205 = arith.subf %201, %204 : vector<2x4xf32>
    %206 = math.exp %205 : vector<2x4xf32>
    %cst_42 = arith.constant dense<0.000000e+00> : vector<2xf32>
    %207 = vector.multi_reduction <add>, %206, %cst_42 [1] : vector<2x4xf32> to vector<2xf32>
    %208 = vector.shape_cast %207 : vector<2xf32> to vector<2x1xf32>
    %209 = vector.broadcast %208 : vector<2x1xf32> to vector<2x4xf32>
    %210 = arith.divf %206, %209 : vector<2x4xf32>
    %c0_43 = arith.constant 0 : index
    %c0_44 = arith.constant 0 : index
    %211 = vector.load %arg10[%c0_43, %c0_44] : memref<2x4xf32, #tpu.memory_space<vmem>>, vector<2x4xf32>
    tpu.vector_store %arg10[%c0_43, %c0_44], %201 {strides = array<i32>} : memref<2x4xf32, #tpu.memory_space<vmem>>, vector<2x4xf32>,
    %c0_45 = arith.constant 0 : index
    %c0_46 = arith.constant 0 : index
    %212 = vector.load %arg9[%c0_45, %c0_46] : memref<2x4xf32, #tpu.memory_space<vmem>>, vector<2x4xf32>
    tpu.vector_store %arg9[%c0_45, %c0_46], %210 {strides = array<i32>} : memref<2x4xf32, #tpu.memory_space<vmem>>, vector<2x4xf32>,
    return
  }
}

</mosaic_0001>

<bundles_post_ra>
// kernel: bilstm_forward.1
= control target key start
LH: loop header
LB: loop body
LE: loop exit
PB: predicated region body
PF: predicated region fallthrough
CT: control target
= control target key end

     0   :  { %16 = vsyncpa [#allocation3], 0  ;;  %v1825_v2 = vmov 0   ;;  %s2219_s0 = inlined_call_operand.vmem [shape: s32[16,1], index: 0, kind: input, shape index: {}]   ;;  %s2220_s1 = inlined_call_operand.vmem [shape: s32[16,1], index: 1, kind: input, shape index: {}]   ;;  %s2221_s2 = inlined_call_operand.vmem [shape: f32[50,16], index: 2, kind: input, shape index: {}]   ;;  %s2222_s3 = inlined_call_operand.vmem [shape: f32[2,16,192], index: 3, kind: input, shape index: {}]   ;;  %s2223_s4 = inlined_call_operand.vmem [shape: f32[64,192], index: 4, kind: input, shape index: {}]   ;;  %s2224_s5 = inlined_call_operand.vmem [shape: f32[1,192], index: 5, kind: input, shape index: {}]   ;;  %s2225_s6 = inlined_call_operand.vmem [shape: f32[1,64], index: 6, kind: input, shape index: {}]   ;;  %s2226_s7 = inlined_call_operand.vmem [shape: f32[64,4], index: 7, kind: input, shape index: {}]   ;;  %s2227_s8 = inlined_call_operand.vmem [shape: f32[1,4], index: 8, kind: input, shape index: {}]   ;;  %s2228_s9 = inlined_call_operand.hbm [shape: f32[2,4], index: 9, kind: output, shape index: {0}]   ;;  %s2229_s10 = inlined_call_operand.hbm [shape: f32[2,4], index: 10, kind: output, shape index: {1}]  }
   0x1   :  { %v59_v0 = vld [vmem:[%s2220_s1] sm:$0xff]  ;;  %1723 = vset.pattern.permute.xlu0 %v1825_v2  ;;  %1724 = vset.pattern.permute.xlu1 %v1825_v2  ;;  %v60_v3 = vld [vmem:[%s2220_s1 + $0x8] sm:$0xff]  ;;  %v38_v8 = vld [vmem:[%s2221_s2 + $0x10] sm:$0xff] }
   0x2   :  { %v45_v1 = vld [vmem:[%s2219_s0] sm:$0xff]  ;;  %v37_v5 = vld [vmem:[%s2221_s2 + $0x8] sm:$0xff]  ;;  %62 = vperm.xlu0 %1723, %v59_v0   ;;  %v39_v9 = vld [vmem:[%s2221_s2 + $0x18] sm:$0xff] }
   0x3   :  { %v36_v4 = vld [vmem:[%s2221_s2] sm:$0xff]  ;;  %48 = vperm.xlu1 %1724, %v45_v1   ;;  %v46_v6 = vld [vmem:[%s2219_s0 + $0x8] sm:$0xff]  ;;  %v1544_v10 = vpack.c.bf16 %v39_v9, %v38_v8 }
   0x4   :  { %v1540_v7 = vpack.c.bf16 %v37_v5, %v36_v4  ;;  %v40_v11 = vld [vmem:[%s2221_s2 + $0x20] sm:$0xff]  ;;  %v41_v12 = vld [vmem:[%s2221_s2 + $0x28] sm:$0xff] }
   0x5   :  { %17 = vsyncpa [#allocation5], 0  ;;  %v1548_v13 = vpack.c.bf16 %v41_v12, %v40_v11  ;;  %v42_v14 = vld [vmem:[%s2221_s2 + $0x30] sm:$0x3]  ;;  %v433_v15 = vld [vmem:[%s2223_s4 + $0x8] sm:$0xff]  ;;  %vm80_vm0 = vcmask 1041408   ;;  %v43_v21 = vlaneseq }
   0x6   :  { %1553 = vmatprep.subr.bf16.mxu1 %v1540_v7  ;;  %1541 = vmatprep.subr.bf16.mxu0 %v1540_v7  ;;  %v435_v16 = vld [vmem:[%s2223_s4 + $0x18] sm:$0xff]  ;;  %v1435_v17 = vld [vmem:[%s2222_s3 + $0x28] sm:$0xff]  ;;  %vm73_vm1 = vcmask 408576   ;;  %v432_v25 = vld [vmem:[%s2223_s4] sm:$0xff]  ;;  %v1826_v29 = vmov 0.0   ;;  %vm249_vm6 = vcmask 130048  }
   0x7   :  { %1555 = vmatpush3.bf16.msra.mxu1 %v1540_v7  ;;  %1543 = vmatpush3.bf16.msra.mxu0 %v1540_v7  ;;  %v1437_v18 = vld [vmem:[%s2222_s3 + $0x38] sm:$0xff]  ;;  %v1932_v19 = vpack.c.bf16 %v435_v16, %v433_v15  ;;  %v44_v22 = vand.u32 127, %v43_v21  ;;  %v434_v26 = vld [vmem:[%s2223_s4 + $0x10] sm:$0xff]  ;;  %v1434_v27 = vld [vmem:[%s2222_s3 + $0x20] sm:$0xff]  ;;  %v419_v4 = vshrl.u32 %v43_v21, 7  ;;  %s1827_s16 = smov 64  }
   0x8   :  { %65 = vperm.xlu0 %1723, %v60_v3   ;;  %51 = vperm.xlu1 %1724, %v46_v6   ;;  %v1564_v20 = vpack.c.bf16 %v1437_v18, %v1435_v17  ;;  %v1436_v28 = vld [vmem:[%s2222_s3 + $0x30] sm:$0xff]  ;;  %v437_v32 = vld [vmem:[%s2223_s4 + $0x28] sm:$0xff]  ;;  %v439_v33 = vld [vmem:[%s2223_s4 + $0x38] sm:$0xff]  ;;  %v1958_v36 = vpack.c.bf16 %v434_v26, %v432_v25  ;;  %vm455_vm7 = vcmask 523264   ;;  %vm1829_vm8 = vmmov 0  }
   0x9   :  { %1557 = vmatprep.subr.bf16.mxu1 %v1544_v10  ;;  %1545 = vmatprep.subr.bf16.mxu0 %v1544_v10  ;;  %v1566_v37 = vpack.c.bf16 %v1436_v28, %v1434_v27  ;;  %v1960_v38 = vpack.c.bf16 %v439_v33, %v437_v32  ;;  %v436_v41 = vld [vmem:[%s2223_s4 + $0x20] sm:$0xff]  ;;  %v438_v42 = vld [vmem:[%s2223_s4 + $0x30] sm:$0xff]  ;;  %v441_v44 = vld [vmem:[%s2223_s4 + $0x48] sm:$0xff]  ;;  %v420_v5 = vsub.s32 0, %v419_v4  ;;  %v424_v9 = vsub.s32 1, %v419_v4 }
   0xa   :  { %v1976_v43 = vpack.c.bf16 %v438_v42, %v436_v41  ;;  %v443_v45 = vld [vmem:[%s2223_s4 + $0x58] sm:$0xff]  ;;  %v241_v46 = vld [vmem:[%s2222_s3 + $0x8] sm:$0xff]  ;;  %v440_v49 = vld [vmem:[%s2223_s4 + $0x40] sm:$0xff]  ;;  %vm1382_vm9 = vcmask 25600  }
   0xb   :  { %1559 = vmatpush3.bf16.msra.mxu1 %v1544_v10  ;;  %1547 = vmatpush3.bf16.msra.mxu0 %v1544_v10  ;;  %v243_v47 = vld [vmem:[%s2222_s3 + $0x18] sm:$0xff]  ;;  %v1991_v48 = vpack.c.bf16 %v443_v45, %v441_v44  ;;  %v442_v51 = vld [vmem:[%s2223_s4 + $0x50] sm:$0xff]  ;;  %v445_v53 = vld [vmem:[%s2223_s4 + $0x68] sm:$0xff] }
   0xc   :  { %1561 = vmatprep.subr.bf16.mxu1 %v1548_v13  ;;  %1549 = vmatprep.subr.bf16.mxu0 %v1548_v13  ;;  %v1568_v50 = vpack.c.bf16 %v243_v47, %v241_v46  ;;  %v2000_v52 = vpack.c.bf16 %v442_v51, %v440_v49  ;;  %v447_v54 = vld [vmem:[%s2223_s4 + $0x78] sm:$0xff]  ;;  %v444_v56 = vld [vmem:[%s2223_s4 + $0x60] sm:$0xff]  ;;  %v446_v57 = vld [vmem:[%s2223_s4 + $0x70] sm:$0xff] }
   0xd   :  { %v2009_v55 = vpack.c.bf16 %v447_v54, %v445_v53  ;;  %v2017_v58 = vpack.c.bf16 %v446_v57, %v444_v56  ;;  %v240_v59 = vld [vmem:[%s2222_s3] sm:$0xff]  ;;  %v242_v60 = vld [vmem:[%s2222_s3 + $0x10] sm:$0xff] }
   0xe   :  { %v1570_v61 = vpack.c.bf16 %v242_v60, %v240_v59  ;;  %v416_v6 = vld [vmem:[%s2224_s5] sm:$0x3] }
   0xf   :  { %1563 = vmatpush3.bf16.msra.mxu1 %v1548_v13  ;;  %1551 = vmatpush3.bf16.msra.mxu0 %v1548_v13  ;;  %v421_v7 = vrot.slane %v416_v6, %v420_v5  ;;  %v425_v13 = vrot.slane %v416_v6, %v424_v9 }
  0x10   :  { %1516 = vmatprep.subr.msk.mxu1 %vm80_vm0, %v42_v14  ;;  %1499 = vmatprep.subr.msk.mxu0 %vm80_vm0, %v42_v14 }
  0x13   :  { %1517 = vmatpush3.msk.msra.mxu1 %vm80_vm0, %v42_v14  ;;  %1500 = vmatpush3.msk.msra.mxu0 %vm80_vm0, %v42_v14 }
  0x14   :  { %1573 = vmatprep.subr.bf16.mxu1 %v1932_v19  ;;  %1565 = vmatprep.subr.bf16.mxu0 %v1564_v20 }
  0x81   :  { %v63_v23 = vpop.permute.xlu0 %62 }
  0x82   :  { %v49_v24 = vpop.permute.xlu1 %48  ;;  %vm67_vm2 = vcmp.eq.s32.totalorder %v44_v22, %v63_v23 }
  0x83   :  { %vm53_vm3 = vcmp.eq.s32.totalorder %v44_v22, %v49_v24  ;;  %v1426_v30 = vsel %vm67_vm2, 1.0, %v1826_v29 }
  0x84   :  { %v1424_v31 = vsel %vm53_vm3, 1.0, %v1826_v29  ;;  %1518 = vmatprep.mubr.msk.f32.mxu1 %vm73_vm1, %v1426_v30 }
  0x85   :  { %1501 = vmatprep.mubr.msk.f32.mxu0 %vm73_vm1, %v1424_v31 }
  0x87   :  { %v66_v34 = vpop.permute.xlu0 %65  ;;  %v52_v35 = vpop.permute.xlu1 %51 }
  0x88   :  { %vm68_vm4 = vcmp.eq.s32.totalorder %v44_v22, %v66_v34  ;;  %vm54_vm5 = vcmp.eq.s32.totalorder %v44_v22, %v52_v35  ;;  %v2069_v22 = vld [vmem:[%s2225_s6] ss:$0 sm:$0xff] }
  0x89   :  { %v1427_v39 = vsel %vm68_vm4, 1.0, %v1826_v29  ;;  %v1425_v40 = vsel %vm54_vm5, 1.0, %v1826_v29 }
  0x8a   :  { %1519 = vmatmul.mubr.msk.f32.vlgmr.msra.gmra.mrb[0].mxu1 %vm73_vm1, %v1427_v39  ;;  %1502 = vmatmul.mubr.msk.f32.vlgmr.msra.gmra.mrb[0].mxu0 %vm73_vm1, %v1425_v40 }
  0x8b   :  { %1575 = vmatpush1.bf16.msra.mxu1 %v1958_v36  ;;  %1567 = vmatpush1.bf16.msra.mxu0 %v1566_v37 }
  0x8c   :  { %1577 = vmatprep.subr.bf16.mxu1 %v1960_v38  ;;  %320 = vmatprep.mubr.f32.mxu0 %v1826_v29 }
  0x8d   :  { %523 = vmatprep.mubr.f32.mxu1 %v1826_v29  ;;  %1569 = vmatprep.subr.bf16.mxu0 %v1568_v50 }
  0x8f   :  { %1579 = vmatpush1.bf16.msra.mxu1 %v1976_v43 }
  0x90   :  { %1581 = vmatprep.subr.bf16.mxu1 %v1991_v48 }
  0x93   :  { %1583 = vmatpush1.bf16.msra.mxu1 %v2000_v52 }
  0x94   :  { %1585 = vmatprep.subr.bf16.mxu1 %v2009_v55 }
  0x97   :  { %1587 = vmatpush1.bf16.msra.mxu1 %v2017_v58 }
  0x98   :  { %1605 = vmatprep.subr.bf16.mxu1 %v1932_v19 }
  0x9a   :  { %524 = vmatmul.mubr.f32.vlgmr.msra.gmra.mrb[2].mxu1 %v1826_v29 }
  0x9b   :  { %1607 = vmatpush1.bf16.msra.mxu1 %v1958_v36  ;;  %726 = vmatprep.mubr.f32.mxu1 %v1826_v29 }
  0x9c   :  { %1609 = vmatprep.subr.bf16.mxu1 %v1960_v38 }
  0x9f   :  { %1611 = vmatpush1.bf16.msra.mxu1 %v1976_v43 }
  0xa0   :  { %1613 = vmatprep.subr.bf16.mxu1 %v1991_v48 }
  0xa3   :  { %1615 = vmatpush1.bf16.msra.mxu1 %v2000_v52 }
  0xa4   :  { %1617 = vmatprep.subr.bf16.mxu1 %v2009_v55 }
  0xa7   :  { %1619 = vmatpush1.bf16.msra.mxu1 %v2017_v58 }
  0xa8   :  { %1637 = vmatprep.subr.bf16.mxu1 %v1932_v19 }
 0x15d   :  { %v1520_v62 = vpop.f32.mrb[0].mxu1  ;;  %v1503_v63 = vpop.f32.mrb[0].mxu0 }
 0x15e   :  { %v231_v0 = vpop.f32.mrb[1].mxu1  ;;  %v150_v1 = vpop.f32.mrb[1].mxu0 }
 0x15f   :  { %1438 = vmatmul.mubr.msk.f32.vlgmr.msra.gmra.mrb[2].mxu0 %vm249_vm6, %v231_v0 }
 0x160   :  { %1571 = vmatpush1.bf16.msra.mxu0 %v1570_v61  ;;  %326 = vmatprep.mubr.f32.mxu0 %v1826_v29 }
 0x161   :  { %1589 = vmatprep.subr.bf16.mxu0 %v1932_v19 }
 0x163   :  { %1439 = vmatmul.mubr.msk.f32.gmra.mrb[4].mxu0 %vm249_vm6, %v1520_v62 }
 0x164   :  { %403 = vmatprep.mubr.f32.mxu0 %v1826_v29 }
 0x167   :  { %1440 = vmatmul.mubr.msk.f32.vlgmr.msra.gmra.mrb[2].mxu0 %vm249_vm6, %v150_v1 }
 0x168   :  { %409 = vmatprep.mubr.f32.mxu0 %v1826_v29  ;;  %1591 = vmatpush1.bf16.msra.mxu0 %v1958_v36 }
 0x169   :  { %1593 = vmatprep.subr.bf16.mxu0 %v1960_v38 }
 0x16b   :  { %1441 = vmatmul.mubr.msk.f32.gmra.mrb[4].mxu0 %vm249_vm6, %v1503_v63 }
 0x16c   :  { %1595 = vmatpush1.bf16.msra.mxu0 %v1976_v43  ;;  %619 = vmatprep.mubr.f32.mxu0 %v1826_v29 }
 0x16d   :  { %1597 = vmatprep.subr.bf16.mxu0 %v1991_v48  ;;  %v525_v2 = vpop.f32.mrb[2].mxu1 }
 0x16e   :  { %v527_v3 = vpop.f32.mrb[3].mxu1 }
 0x16f   :  { %v537_v23 = vadd.f32 %v2069_v22, %v527_v3 }
 0x170   :  { %1599 = vmatpush1.bf16.msra.mxu0 %v2000_v52 }
 0x171   :  { %1601 = vmatprep.subr.bf16.mxu0 %v2009_v55 }
 0x174   :  { %1603 = vmatpush1.bf16.msra.mxu0 %v2017_v58 }
 0x175   :  { %1621 = vmatprep.subr.bf16.mxu0 %v1932_v19 }
 0x23a   :  { %v405_v8 = vpop.f32.mrb[2].mxu0 }
 0x23b   :  { %v2059_v10 = vadd.f32 %v421_v7, %v405_v8  ;;  %v407_v11 = vpop.f32.mrb[3].mxu0 }
 0x23c   :  { %v2072_v25 = vadd.f32 %v425_v13, %v407_v11 }
 0x23d   :  { %v530_v12 = vadd.f32 %v525_v2, %v2059_v10 }
 0x23e   :  { %v411_v14 = vpop.f32.mrb[4].mxu0 }
 0x23f   :  { %v1443_v15 = vmul.f32 -1.442695, %v530_v12  ;;  %v2062_v16 = vadd.f32 %v421_v7, %v411_v14  ;;  %v413_v17 = vpop.f32.mrb[5].mxu0 }
 0x240   :  { %v2064_v18 = vadd.f32 %v425_v13, %v413_v17 }
 0x241   :  { %1725 = vpow2.f32 %v1443_v15 }
 0x24b   :  { %v1726_v20 = vpop.eup %1725 }
 0x24c   :  { %v534_v21 = vadd.f32 1.0, %v1726_v20 }
 0x24e   :  { %1727 = vrcp.f32 %v534_v21 }
 0x258   :  { %v1728_v24 = vpop.eup %1727 }
 0x259   :  { %v538_v26 = vmul.f32 %v1728_v24, %v537_v23 }
 0x25b   :  { %v539_v27 = vadd.f32 %v538_v26, %v2072_v25 }
 0x25d   :  { %1729 = vtanh.f32 %v539_v27 }
 0x267   :  { %v1730_v28 = vpop.eup %1729 }
 0x268   :  { %v541_v30 = vsub.f32 0.0, %v1730_v28 }
 0x26a   :  { %543 = vrot.lane.b32.xlu0 %v541_v30, %s1827_s16 }
 0x2dc   :  { %v544_v31 = vpop.permute.xlu0 %543 }
 0x2dd   :  { %v546_v32 = vmul.f32 %v1728_v24, %v544_v31 }
 0x2df   :  { %548 = vrot.lane.b32.xlu1 %v546_v32, %s1827_s16 }
 0x351   :  { %v549_v33 = vpop.permute.xlu1 %548 }
 0x352   :  { %v551_v34 = vadd.f32 %v1730_v28, %v549_v33 }
 0x354   :  { %1444 = vmatmul.mubr.msk.f32.vlgmr.msra.gmra.mrb[6].mxu0 %vm455_vm7, %v551_v34 }
 0x355   :  { %1623 = vmatpush1.bf16.msra.mxu0 %v1958_v36  ;;  %833 = vmatprep.mubr.f32.mxu0 %v1826_v29 }
 0x356   :  { %1625 = vmatprep.subr.bf16.mxu0 %v1960_v38 }
 0x359   :  { %1627 = vmatpush1.bf16.msra.mxu0 %v1976_v43 }
 0x35a   :  { %1629 = vmatprep.subr.bf16.mxu0 %v1991_v48 }
 0x35d   :  { %1631 = vmatpush1.bf16.msra.mxu0 %v2000_v52 }
 0x35e   :  { %1633 = vmatprep.subr.bf16.mxu0 %v2009_v55 }
 0x361   :  { %1635 = vmatpush1.bf16.msra.mxu0 %v2017_v58 }
 0x362   :  { %1653 = vmatprep.subr.bf16.mxu0 %v1932_v19 }
 0x427   :  { %v621_v35 = vpop.f32.mrb[6].mxu0 }
 0x428   :  { %v627_v37 = vrot.slane %v621_v35, 6  ;;  %v623_v39 = vpop.f32.mrb[7].mxu0 }
 0x429   :  { %v636_v45 = vadd.f32 %v2069_v22, %v623_v39 }
 0x42a   :  { %v629_v40 = vadd.f32 %v627_v37, %v2059_v10 }
 0x42b   :  { %v638_v46 = vrot.slane %v636_v45, 6 }
 0x42c   :  { %v1445_v41 = vmul.f32 -1.442695, %v629_v40 }
 0x42e   :  { %1731 = vpow2.f32 %v1445_v41 }
 0x438   :  { %v1732_v42 = vpop.eup %1731 }
 0x439   :  { %v633_v44 = vadd.f32 1.0, %v1732_v42 }
 0x43b   :  { %1733 = vrcp.f32 %v633_v44 }
 0x445   :  { %v1734_v47 = vpop.eup %1733 }
 0x446   :  { %v640_v49 = vmul.f32 %v1734_v47, %v638_v46 }
 0x448   :  { %v641_v50 = vadd.f32 %v640_v49, %v2072_v25 }
 0x44a   :  { %1735 = vtanh.f32 %v641_v50 }
 0x454   :  { %v1736_v51 = vpop.eup %1735 }
 0x455   :  { %v644_v53 = vrot.slane %v1736_v51, 2 }
 0x457   :  { %v646_v54 = vsub.f32 %v551_v34, %v644_v53 }
 0x459   :  { %v648_v56 = vrot.slane %v646_v54, 6 }
 0x45b   :  { %649 = vrot.lane.b32.xlu0 %v648_v56, %s1827_s16 }
 0x4cd   :  { %v650_v57 = vpop.permute.xlu0 %649 }
 0x4ce   :  { %v652_v59 = vmul.f32 %v1734_v47, %v650_v57 }
 0x4d0   :  { %654 = vrot.lane.b32.xlu1 %v652_v59, %s1827_s16 }
 0x542   :  { %v655_v60 = vpop.permute.xlu1 %654 }
 0x543   :  { %v657_v61 = vadd.f32 %v1736_v51, %v655_v60 }
 0x545   :  { %v659_v62 = vrot.slane %v657_v61, 2 }
 0x547   :  { %1446 = vmatmul.mubr.msk.f32.vlgmr.msra.gmra.mrb[4].mxu1 %vm455_vm7, %v659_v62 }
 0x548   :  { %1639 = vmatpush1.bf16.msra.mxu1 %v1958_v36  ;;  %940 = vmatprep.mubr.f32.mxu1 %v1826_v29 }
 0x549   :  { %1641 = vmatprep.subr.bf16.mxu1 %v1960_v38 }
 0x54c   :  { %1643 = vmatpush1.bf16.msra.mxu1 %v1976_v43 }
 0x54d   :  { %1645 = vmatprep.subr.bf16.mxu1 %v1991_v48 }
 0x550   :  { %1647 = vmatpush1.bf16.msra.mxu1 %v2000_v52 }
 0x551   :  { %1649 = vmatprep.subr.bf16.mxu1 %v2009_v55 }
 0x554   :  { %1651 = vmatpush1.bf16.msra.mxu1 %v2017_v58 }
 0x555   :  { %1669 = vmatprep.subr.bf16.mxu1 %v1932_v19 }
 0x61a   :  { %v728_v63 = vpop.f32.mrb[4].mxu1 }
 0x61b   :  { %v734_v0 = vrot.slane %v728_v63, 4  ;;  %v730_v1 = vpop.f32.mrb[5].mxu1 }
 0x61c   :  { %v743_v6 = vadd.f32 %v2069_v22, %v730_v1 }
 0x61d   :  { %v736_v2 = vadd.f32 %v734_v0, %v2059_v10 }
 0x61e   :  { %v745_v7 = vrot.slane %v743_v6, 4 }
 0x61f   :  { %v1447_v3 = vmul.f32 -1.442695, %v736_v2 }
 0x621   :  { %1737 = vpow2.f32 %v1447_v3 }
 0x62b   :  { %v1738_v4 = vpop.eup %1737 }
 0x62c   :  { %v740_v5 = vadd.f32 1.0, %v1738_v4 }
 0x62e   :  { %1739 = vrcp.f32 %v740_v5 }
 0x638   :  { %v1740_v8 = vpop.eup %1739 }
 0x639   :  { %v747_v9 = vmul.f32 %v1740_v8, %v745_v7 }
 0x63b   :  { %v748_v11 = vadd.f32 %v747_v9, %v2072_v25 }
 0x63d   :  { %1741 = vtanh.f32 %v748_v11 }
 0x647   :  { %v1742_v12 = vpop.eup %1741 }
 0x648   :  { %v751_v13 = vrot.slane %v1742_v12, 2 }
 0x64a   :  { %v753_v14 = vsub.f32 %v657_v61, %v751_v13 }
 0x64c   :  { %v755_v15 = vrot.slane %v753_v14, 6 }
 0x64e   :  { %756 = vrot.lane.b32.xlu0 %v755_v15, %s1827_s16 }
 0x6c0   :  { %v757_v17 = vpop.permute.xlu0 %756 }
 0x6c1   :  { %v759_v20 = vmul.f32 %v1740_v8, %v757_v17 }
 0x6c3   :  { %761 = vrot.lane.b32.xlu1 %v759_v20, %s1827_s16 }
 0x735   :  { %v762_v21 = vpop.permute.xlu1 %761 }
 0x736   :  { %v764_v23 = vadd.f32 %v1742_v12, %v762_v21 }
 0x738   :  { %v766_v24 = vrot.slane %v764_v23, 4 }
 0x73a   :  { %1448 = vmatmul.mubr.msk.f32.vlgmr.msra.gmra.mrb[8].mxu0 %vm455_vm7, %v766_v24 }
 0x73b   :  { %1655 = vmatpush1.bf16.msra.mxu0 %v1958_v36  ;;  %1040 = vmatprep.mubr.f32.mxu0 %v1826_v29 }
 0x73c   :  { %1657 = vmatprep.subr.bf16.mxu0 %v1960_v38 }
 0x73f   :  { %1659 = vmatpush1.bf16.msra.mxu0 %v1976_v43 }
 0x740   :  { %1661 = vmatprep.subr.bf16.mxu0 %v1991_v48 }
 0x743   :  { %1663 = vmatpush1.bf16.msra.mxu0 %v2000_v52 }
 0x744   :  { %1665 = vmatprep.subr.bf16.mxu0 %v2009_v55 }
 0x747   :  { %1667 = vmatpush1.bf16.msra.mxu0 %v2017_v58 }
 0x748   :  { %1685 = vmatprep.subr.bf16.mxu0 %v1932_v19 }
 0x80d   :  { %v835_v26 = vpop.f32.mrb[8].mxu0 }
 0x80e   :  { %v841_v27 = vrot.slane %v835_v26, 2  ;;  %v837_v28 = vpop.f32.mrb[9].mxu0 }
 0x80f   :  { %v850_v34 = vadd.f32 %v2069_v22, %v837_v28 }
 0x810   :  { %v843_v30 = vadd.f32 %v841_v27, %v2059_v10 }
 0x811   :  { %v852_v35 = vrot.slane %v850_v34, 2 }
 0x812   :  { %v1449_v31 = vmul.f32 -1.442695, %v843_v30 }
 0x814   :  { %1743 = vpow2.f32 %v1449_v31 }
 0x81e   :  { %v1744_v32 = vpop.eup %1743 }
 0x81f   :  { %v847_v33 = vadd.f32 1.0, %v1744_v32 }
 0x821   :  { %1745 = vrcp.f32 %v847_v33 }
 0x82b   :  { %v1746_v37 = vpop.eup %1745 }
 0x82c   :  { %v854_v39 = vmul.f32 %v1746_v37, %v852_v35 }
 0x82e   :  { %v855_v40 = vadd.f32 %v854_v39, %v2072_v25 }
 0x830   :  { %1747 = vtanh.f32 %v855_v40 }
 0x83a   :  { %v1748_v41 = vpop.eup %1747 }
 0x83b   :  { %v858_v19 = vrot.slane %v1748_v41, 2 }
 0x83d   :  { %v860_v42 = vsub.f32 %v764_v23, %v858_v19 }
 0x83f   :  { %v862_v44 = vrot.slane %v860_v42, 6 }
 0x841   :  { %863 = vrot.lane.b32.xlu0 %v862_v44, %s1827_s16 }
 0x8b3   :  { %v864_v10 = vpop.permute.xlu0 %863 }
 0x8b4   :  { %v866_v45 = vmul.f32 %v1746_v37, %v864_v10 }
 0x8b6   :  { %868 = vrot.lane.b32.xlu1 %v866_v45, %s1827_s16 }
 0x928   :  { %v869_v46 = vpop.permute.xlu1 %868 }
 0x929   :  { %v871_v47 = vadd.f32 %v1748_v41, %v869_v46 }
 0x92b   :  { %v873_v49 = vrot.slane %v871_v47, 6 }
 0x92d   :  { %1450 = vmatmul.mubr.msk.f32.vlgmr.msra.gmra.mrb[6].mxu1 %vm455_vm7, %v873_v49 }
 0x92e   :  { %1671 = vmatpush1.bf16.msra.mxu1 %v1958_v36  ;;  %1147 = vmatprep.mubr.f32.mxu1 %v1826_v29 }
 0x92f   :  { %1673 = vmatprep.subr.bf16.mxu1 %v1960_v38 }
 0x932   :  { %1675 = vmatpush1.bf16.msra.mxu1 %v1976_v43 }
 0x933   :  { %1677 = vmatprep.subr.bf16.mxu1 %v1991_v48 }
 0x936   :  { %1679 = vmatpush1.bf16.msra.mxu1 %v2000_v52 }
 0x937   :  { %1681 = vmatprep.subr.bf16.mxu1 %v2009_v55 }
 0x93a   :  { %1683 = vmatpush1.bf16.msra.mxu1 %v2017_v58 }
 0xa00   :  { %v942_v25 = vpop.f32.mrb[6].mxu1 }
 0xa01   :  { %v947_v50 = vadd.f32 %v942_v25, %v2062_v16  ;;  %v944_v51 = vpop.f32.mrb[7].mxu1 }
 0xa02   :  { %v954_v57 = vadd.f32 %v2069_v22, %v944_v51 }
 0xa03   :  { %v1451_v53 = vmul.f32 -1.442695, %v947_v50 }
 0xa05   :  { %1749 = vpow2.f32 %v1451_v53 }
 0xa0f   :  { %v1750_v54 = vpop.eup %1749 }
 0xa10   :  { %v951_v56 = vadd.f32 1.0, %v1750_v54 }
 0xa12   :  { %1751 = vrcp.f32 %v951_v56 }
 0xa1c   :  { %v1752_v59 = vpop.eup %1751 }
 0xa1d   :  { %v955_v60 = vmul.f32 %v1752_v59, %v954_v57 }
 0xa1f   :  { %v956_v61 = vadd.f32 %v955_v60, %v2064_v18 }
 0xa21   :  { %1753 = vtanh.f32 %v956_v61 }
 0xa2b   :  { %v1754_v62 = vpop.eup %1753 }
 0xa2c   :  { %v959_v63 = vrot.slane %v1754_v62, 2 }
 0xa2e   :  { %v961_v0 = vsub.f32 %v871_v47, %v959_v63 }
 0xa30   :  { %v963_v1 = vrot.slane %v961_v0, 6  ;;  %v1293_v0 = vld [vmem:[%s2226_s7] sm:$0xff] }
 0xa32   :  { %964 = vrot.lane.b32.xlu0 %v963_v1, %s1827_s16  ;;  %v1295_v1 = vld [vmem:[%s2226_s7 + $0x10] sm:$0xff] }
 0xaa4   :  { %v965_v2 = vpop.permute.xlu0 %964 }
 0xaa5   :  { %v967_v3 = vmul.f32 %v1752_v59, %v965_v2  ;;  %v1828_v2 = vmov 0.0|0.0  }
 0xaa6   :  { %1700 = vmatprep.subr.bf16.mxu1 %v1828_v2 }
 0xaa7   :  { %969 = vrot.lane.b32.xlu1 %v967_v3, %s1827_s16 }
 0xb19   :  { %v970_v4 = vpop.permute.xlu1 %969 }
 0xb1a   :  { %v972_v5 = vadd.f32 %v1754_v62, %v970_v4 }
 0xb1c   :  { %1452 = vmatmul.mubr.msk.f32.vlgmr.msra.gmra.mrb[10].mxu0 %vm455_vm7, %v972_v5 }
 0xb1d   :  { %1687 = vmatpush1.bf16.msra.mxu0 %v1958_v36  ;;  %1254 = vmatprep.mubr.f32.mxu0 %v1826_v29 }
 0xb1e   :  { %1689 = vmatprep.subr.bf16.mxu0 %v1960_v38 }
 0xb21   :  { %1691 = vmatpush1.bf16.msra.mxu0 %v1976_v43 }
 0xb22   :  { %1693 = vmatprep.subr.bf16.mxu0 %v1991_v48 }
 0xb25   :  { %1695 = vmatpush1.bf16.msra.mxu0 %v2000_v52 }
 0xb26   :  { %1697 = vmatprep.subr.bf16.mxu0 %v2009_v55 }
 0xb29   :  { %1699 = vmatpush1.bf16.msra.mxu0 %v2017_v58 }
 0xbef   :  { %v1042_v6 = vpop.f32.mrb[10].mxu0 }
 0xbf0   :  { %v1048_v7 = vrot.slane %v1042_v6, 6  ;;  %v1044_v8 = vpop.f32.mrb[11].mxu0  ;;  %v1298_v6 = vld [vmem:[%s2226_s7 + $0x28] sm:$0xff] }
 0xbf1   :  { %v1057_v38 = vadd.f32 %v2069_v22, %v1044_v8 }
 0xbf2   :  { %v1050_v9 = vadd.f32 %v1048_v7, %v2062_v16 }
 0xbf3   :  { %v1059_v43 = vrot.slane %v1057_v38, 6 }
 0xbf4   :  { %v1453_v36 = vmul.f32 -1.442695, %v1050_v9 }
 0xbf6   :  { %1755 = vpow2.f32 %v1453_v36 }
 0xc00   :  { %v1756_v11 = vpop.eup %1755 }
 0xc01   :  { %v1054_v12 = vadd.f32 1.0, %v1756_v11  ;;  %v1299_v11 = vld [vmem:[%s2226_s7 + $0x30] sm:$0xff] }
 0xc03   :  { %1757 = vrcp.f32 %v1054_v12  ;;  %v1300_v12 = vld [vmem:[%s2226_s7 + $0x38] sm:$0xff] }
 0xc04   :  { %v1710_v38 = vpack.c.bf16 %v1300_v12, %v1299_v11 }
 0xc0d   :  { %v1758_v48 = vpop.eup %1757 }
 0xc0e   :  { %v1061_v13 = vmul.f32 %v1758_v48, %v1059_v43 }
 0xc10   :  { %v1062_v52 = vadd.f32 %v1061_v13, %v2064_v18 }
 0xc12   :  { %1759 = vtanh.f32 %v1062_v52 }
 0xc1c   :  { %v1760_v55 = vpop.eup %1759 }
 0xc1d   :  { %v1065_v58 = vrot.slane %v1760_v55, 2 }
 0xc1f   :  { %v1067_v14 = vsub.f32 %v972_v5, %v1065_v58  ;;  %v1297_v5 = vld [vmem:[%s2226_s7 + $0x20] sm:$0xff] }
 0xc20   :  { %v1707_v9 = vpack.c.bf16 %v1298_v6, %v1297_v5  ;;  %v1458_v58 = vld [vmem:[%s2227_s8] ss:$0 sm:$0xff] }
 0xc21   :  { %v1069_v15 = vrot.slane %v1067_v14, 6 }
 0xc23   :  { %1070 = vrot.lane.b32.xlu0 %v1069_v15, %s1827_s16 }
 0xc95   :  { %v1071_v17 = vpop.permute.xlu0 %1070 }
 0xc96   :  { %v1073_v20 = vmul.f32 %v1758_v48, %v1071_v17 }
 0xc98   :  { %1075 = vrot.lane.b32.xlu1 %v1073_v20, %s1827_s16 }
 0xd0a   :  { %v1076_v21 = vpop.permute.xlu1 %1075 }
 0xd0b   :  { %v1078_v23 = vadd.f32 %v1760_v55, %v1076_v21 }
 0xd0d   :  { %v1080_v24 = vrot.slane %v1078_v23, 2 }
 0xd0f   :  { %1454 = vmatmul.mubr.msk.f32.vlgmr.msra.gmra.mrb[8].mxu1 %vm455_vm7, %v1080_v24 }
 0xd10   :  { %1537 = vmatprep.mubr.msk.f32.mxu1 %vm1829_vm8, %v1826_v29 }
 0xde2   :  { %v1149_v26 = vpop.f32.mrb[8].mxu1 }
 0xde3   :  { %v1155_v27 = vrot.slane %v1149_v26, 4  ;;  %v1151_v28 = vpop.f32.mrb[9].mxu1 }
 0xde4   :  { %v1164_v34 = vadd.f32 %v2069_v22, %v1151_v28 }
 0xde5   :  { %v1157_v30 = vadd.f32 %v1155_v27, %v2062_v16 }
 0xde6   :  { %v1166_v35 = vrot.slane %v1164_v34, 4 }
 0xde7   :  { %v1455_v31 = vmul.f32 -1.442695, %v1157_v30 }
 0xde9   :  { %1761 = vpow2.f32 %v1455_v31 }
 0xdf3   :  { %v1762_v32 = vpop.eup %1761 }
 0xdf4   :  { %v1161_v33 = vadd.f32 1.0, %v1762_v32 }
 0xdf6   :  { %1763 = vrcp.f32 %v1161_v33 }
 0xe00   :  { %v1764_v37 = vpop.eup %1763 }
 0xe01   :  { %v1168_v39 = vmul.f32 %v1764_v37, %v1166_v35 }
 0xe03   :  { %v1169_v40 = vadd.f32 %v1168_v39, %v2064_v18 }
 0xe05   :  { %1765 = vtanh.f32 %v1169_v40 }
 0xe0f   :  { %v1766_v41 = vpop.eup %1765 }
 0xe10   :  { %v1172_v19 = vrot.slane %v1766_v41, 2 }
 0xe12   :  { %v1174_v42 = vsub.f32 %v1078_v23, %v1172_v19 }
 0xe14   :  { %v1176_v44 = vrot.slane %v1174_v42, 6 }
 0xe16   :  { %1177 = vrot.lane.b32.xlu0 %v1176_v44, %s1827_s16 }
 0xe88   :  { %v1178_v10 = vpop.permute.xlu0 %1177 }
 0xe89   :  { %v1180_v45 = vmul.f32 %v1764_v37, %v1178_v10 }
 0xe8b   :  { %1182 = vrot.lane.b32.xlu1 %v1180_v45, %s1827_s16 }
 0xefd   :  { %v1183_v46 = vpop.permute.xlu1 %1182 }
 0xefe   :  { %v1185_v47 = vadd.f32 %v1766_v41, %v1183_v46 }
 0xf00   :  { %v1187_v49 = vrot.slane %v1185_v47, 4 }
 0xf02   :  { %1456 = vmatmul.mubr.msk.f32.vlgmr.msra.gmra.mrb[12].mxu0 %vm455_vm7, %v1187_v49 }
 0xfd5   :  { %v1256_v25 = vpop.f32.mrb[12].mxu0 }
 0xfd6   :  { %v1262_v50 = vrot.slane %v1256_v25, 2  ;;  %v1258_v51 = vpop.f32.mrb[13].mxu0 }
 0xfd7   :  { %v1271_v59 = vadd.f32 %v2069_v22, %v1258_v51 }
 0xfd8   :  { %v1264_v53 = vadd.f32 %v1262_v50, %v2062_v16  ;;  %v1294_v16 = vld [vmem:[%s2226_s7 + $0x8] sm:$0xff] }
 0xfd9   :  { %v1273_v60 = vrot.slane %v1271_v59, 2  ;;  %v1701_v22 = vpack.c.bf16 %v1294_v16, %v1293_v0 }
 0xfda   :  { %v1457_v54 = vmul.f32 -1.442695, %v1264_v53 }
 0xfdb   :  { %1702 = vmatpush3.bf16.msra.mxu1 %v1701_v22 }
 0xfdc   :  { %1767 = vpow2.f32 %v1457_v54  ;;  %1703 = vmatprep.subr.bf16.mxu1 %v1828_v2 }
 0xfe6   :  { %v1768_v56 = vpop.eup %1767 }
 0xfe7   :  { %v1268_v57 = vadd.f32 1.0, %v1768_v56 }
 0xfe9   :  { %1769 = vrcp.f32 %v1268_v57 }
 0xff3   :  { %v1770_v61 = vpop.eup %1769 }
 0xff4   :  { %v1275_v62 = vmul.f32 %v1770_v61, %v1273_v60 }
 0xff6   :  { %v1276_v63 = vadd.f32 %v1275_v62, %v2064_v18  ;;  %v1296_v18 = vld [vmem:[%s2226_s7 + $0x18] sm:$0xff]  ;;  %s1830_s7 = smov [#allocation4]  }
 0xff7   :  { %v1704_v3 = vpack.c.bf16 %v1296_v18, %v1295_v1  ;;  %s1412_s4 = sshll.u32 %s1830_s7, 4  ;;  %s1413_s4 = int_to_ptr.vmem [resolvable:$true] %s1412_s4 }
 0xff8   :  { %1771 = vtanh.f32 %v1276_v63  ;;  %s1777_s8 = scalar_lea.vmem %s1413_s4, 32  ;;  %p1782_p1 = scmp.lt.s32.totalorder %s1413_s4, %s1413_s4 }
 0xff9   :  { %1705 = vmatpush3.bf16.msra.mxu1 %v1704_v3  ;;  %p1778_p0 = scmp.ne.s32.totalorder %s1413_s4, %s1777_s8  ;;  %p1783_p2 = scmp.lt.s32.totalorder %s1777_s8, %s1777_s8 }
 0xffa   :  { %1706 = vmatprep.subr.bf16.mxu1 %v1828_v2 }
 0xffb   :  { %p1784_p3 = por %p1783_p2, %p1782_p1 }
 0xffd   :  { %1708 = vmatpush3.bf16.msra.mxu1 %v1707_v9  ;;  %p1785_p4 = pnand %p1784_p3, %p1778_p0 }
 0xffe   :  { %1709 = vmatprep.subr.bf16.mxu1 %v1828_v2 }
0x1001   :  { %1711 = vmatpush3.bf16.msra.mxu1 %v1710_v38 }
0x1002   :  { %v1772_v4 = vpop.eup %1771 }
0x1003   :  { %v1279_v7 = vrot.slane %v1772_v4, 2 }
0x1005   :  { %v1281_v8 = vsub.f32 %v1185_v47, %v1279_v7 }
0x1007   :  { %v1283_v36 = vrot.slane %v1281_v8, 6 }
0x1009   :  { %1284 = vrot.lane.b32.xlu0 %v1283_v36, %s1827_s16 }
0x107b   :  { %v1285_v43 = vpop.permute.xlu0 %1284 }
0x107c   :  { %v1287_v48 = vmul.f32 %v1770_v61, %v1285_v43 }
0x107e   :  { %1289 = vrot.lane.b32.xlu1 %v1287_v48, %s1827_s16 }
0x10f0   :  { %v1290_v13 = vpop.permute.xlu1 %1289 }
0x10f1   :  { %v1292_v52 = vadd.f32 %v1772_v4, %v1290_v13 }
0x10f3   :  { %v1309_v55 = vrot.slane %v1292_v52, 6 }
0x10f5   :  { %1538 = vmatmul.mubr.msk.f32.vlgmr.msra.gmra.mrb[10].mxu1 %vm455_vm7, %v1309_v55 }
0x11c8   :  { %v1378_v14 = vpop.f32.mrb[10].mxu1 }
0x11c9   :  { %v1379_v15 = vadd.f32 %v1458_v58, %v1378_v14  ;;  %v1539_v17 = vpop.f32.mrb[11].mxu1 }
0x11cb   :  { %v1383_v20 = vsel %vm1382_vm9, %v1379_v15, -inf  ;;  %1394 = vst.msk [vmem:[#allocation4] sm:$0x3] %vm1382_vm9, %v1379_v15 }
0x11cc   :  { %1384 = vmax.xlane.f32.xlu0 %v1383_v20 }
0x1259   :  { %v1385_v29 = vpop.xlane.xlu0 %1384 }
0x125a   :  { %v1386_v21 = vsub.f32 %v1379_v15, %v1385_v29 }
0x125c   :  { %v1387_v23 = vmul.f32 1.442695, %v1386_v21 }
0x125e   :  { %1773 = vpow2.f32 %v1387_v23 }
0x1268   :  { %v1774_v24 = vpop.eup %1773 }
0x1269   :  { %v1389_v26 = vsel %vm1382_vm9, %v1774_v24, 0.0 }
0x126a   :  { %1390 = vadd.xlane.f32.xlu1 %v1389_v26 }
0x126b   :  { %1788 = shalt.err (!%p1785_p4)
}
0x126c   :  { %s1789_s13 = scalar_lea.hbm %s2229_s10, 32 }
0x126d   :  { %p1790_p5 = scmp.ne.s32.totalorder %s2229_s10, %s1789_s13  ;;  %p1793_p6 = scmp.lt.u32.totalorder %s1789_s13, %s2229_s10 }
0x126f   :  { %p1795_p7 = pnand %p1793_p6, %p1790_p5 }
0x1271   :  { %1798 = shalt.err (!%p1795_p7)
}
0x1272   :  { %1415 = dma.vmem_to_hbm [thread:$0]  %s1413_s4, 32, %s2229_s10, [#allocation5]  }
0x1273   :  { %s1831_s17 = smov [#allocation2]  }
0x1274   :  { %s1402_s18 = sshll.u32 %s1831_s17, 4  ;;  %s1403_s18 = int_to_ptr.vmem [resolvable:$true] %s1402_s18 }
0x1275   :  { %s1799_s19 = scalar_lea.vmem %s1403_s18, 32  ;;  %p1804_p9 = scmp.lt.s32.totalorder %s1403_s18, %s1403_s18 }
0x1276   :  { %p1800_p8 = scmp.ne.s32.totalorder %s1403_s18, %s1799_s19  ;;  %p1805_p10 = scmp.lt.s32.totalorder %s1799_s19, %s1799_s19 }
0x1278   :  { %p1806_p11 = por %p1805_p10, %p1804_p9 }
0x127a   :  { %p1807_p12 = pnand %p1806_p11, %p1800_p8 }
0x12f7   :  { %v1391_v27 = vpop.xlane.xlu1 %1390 }
0x12f8   :  { %1775 = vrcp.f32 %v1391_v27 }
0x1302   :  { %v1776_v28 = vpop.eup %1775 }
0x1303   :  { %v1393_v30 = vmul.f32 %v1776_v28, %v1774_v24 }
0x1305   :  { %1395 = vst.msk [vmem:[#allocation2] sm:$0x3] %vm1382_vm9, %v1393_v30 }
0x1306   :  { %1810 = shalt.err (!%p1807_p12)
}
0x1307   :  { %s1811_s10 = scalar_lea.hbm %s2228_s9, 32 }
0x1308   :  { %p1812_p13 = scmp.ne.s32.totalorder %s2228_s9, %s1811_s10  ;;  %p1815_p0 = scmp.lt.u32.totalorder %s1811_s10, %s2228_s9 }
0x130a   :  { %p1817_p1 = pnand %p1815_p0, %p1812_p13 }
0x130c   :  { %1820 = shalt.err (!%p1817_p1)
}
0x130d   :  { %1405 = dma.vmem_to_hbm [thread:$0]  %s1403_s18, 32, %s2228_s9, [#allocation3]  }
0x130e   :  { %1821 = dma.done.wait [#allocation3], 32  }
0x130f   :  { %1822 = vsyncadd [#allocation3], 4294967264 }
0x1310   :  { %1823 = dma.done.wait [#allocation5], 32  }
0x1311   :  { %1824 = vsyncadd [#allocation5], 4294967264 }
0x1312   :  { %1422 = vsyncpa [#allocation3], 1 }
0x1313   :  { %1423 = vsyncpa [#allocation5], 1 }

</bundles_post_ra>
